<compile_context>
chip_gen: v7x
topology: tpu7x:2x2x1
jax: 0.10.0
libtpu: 0.0.40
codegen_flags: <defaults>
</compile_context>

<pallas_src>
import math

import jax
import jax.numpy as jnp
from jax.experimental import pallas as pl
from jax.experimental.pallas import tpu as pltpu

LANE = 128     # lane width; output head padded to a multiple of this
SUBLANE = 8    # f32 sublane count; batch padded to a multiple of this


def _lstm_predictor_kernel(x_ref, wih_ref, whh_ref, b_ref, wout_ref, bout_ref,
                           out_ref, xw_ref):
    """Whole LSTM + Linear forward in a single invocation.

    x_ref    : (T*Bp, D)  bf16, time-major rows; step t is rows [t*Bp:(t+1)*Bp]
    wih_ref  : (D, 4H)    bf16, W_ih^T, gate-permuted [i,f,o|g]
    whh_ref  : (H, 4H)    bf16, W_hh^T, gate-permuted
    b_ref    : (1, 4H)    f32,  b_ih + b_hh, gate-permuted
    wout_ref : (H, Op)    bf16, W_out^T zero-padded to Op lanes
    bout_ref : (1, Op)    f32,  b_out zero-padded
    out_ref  : (Bp, Op)   f32
    xw_ref   : (T*Bp, 4H) f32 VMEM scratch for the batched input projection
    """
    TB = x_ref.shape[0]
    Bp = out_ref.shape[0]
    H = whh_ref.shape[0]
    T = TB // Bp
    H3 = 3 * H

    # Phase 1: one batched bf16 GEMM over ALL timesteps, f32 accumulate, bias
    # broadcast hoisted out of the recurrence.  Result lands in VMEM scratch.
    xw_ref[...] = (
        jnp.dot(x_ref[...], wih_ref[...], preferred_element_type=jnp.float32)
        + b_ref[...])

    whh = whh_ref[...]                                   # (H, 4H) bf16, loaded once

    h = jnp.zeros((Bp, H), jnp.float32)
    c = jnp.zeros((Bp, H), jnp.float32)

    # Phase 2: serial recurrence.  T is small and static -> full unroll with
    # static, sublane-aligned slice offsets (Bp is a multiple of 8).
    # TODO(synk): for long sequences (T >~ 32) switch to lax.fori_loop(unroll=4)
    # to bound live ranges / code size.
    for t in range(T):
        xw_t = xw_ref[pl.ds(t * Bp, Bp), :]              # (Bp, 4H) f32, aligned load
        g = xw_t + jnp.dot(h.astype(jnp.bfloat16), whh,
                           preferred_element_type=jnp.float32)   # (Bp, 4H) f32

        # Permuted gate order [i, f, o | g]: sigmoid only on the first 3H lanes,
        # tanh only on the last H lanes.
        sig = jax.nn.sigmoid(g[:, :H3])
        gg = jnp.tanh(g[:, H3:])
        i_g = sig[:, 0 * H:1 * H]
        f_g = sig[:, 1 * H:2 * H]
        o_g = sig[:, 2 * H:3 * H]

        c = f_g * c + i_g * gg
        h = o_g * jnp.tanh(c)

    # Phase 3: output Linear on h_T.  Padded weight columns are zero, so the
    # extra lanes of the (Bp, Op) full-tile store hold zeros; sliced off outside.
    y = (jnp.dot(h.astype(jnp.bfloat16), wout_ref[...],
                 preferred_element_type=jnp.float32) + bout_ref[...])
    out_ref[...] = y.astype(out_ref.dtype)


def predictor_forward(x, kernel_params, output_dim):
    """x: (B, T, D) float32, batch_first.  Returns (B, output_dim) float32."""
    wih_t, whh_t, bias, wout_pad, bout_pad = kernel_params
    B, T, D = x.shape
    H = whh_t.shape[0]
    Op = wout_pad.shape[1]

    # Pad batch to the f32 sublane count and go time-major, so the recurrence
    # works on vreg-aligned (Bp, 4H) tiles and the output store is unmasked.
    Bp = max(SUBLANE, ((B + SUBLANE - 1) // SUBLANE) * SUBLANE)
    x_tm = jnp.transpose(x, (1, 0, 2)).astype(jnp.bfloat16)          # (T, B, D)
    x_pad = jnp.zeros((T, Bp, D), jnp.bfloat16).at[:, :B, :].set(x_tm)
    x_flat = x_pad.reshape(T * Bp, D)                                # (T*Bp, D)

    vmem = pltpu.MemorySpace.VMEM
    out = pl.pallas_call(
        _lstm_predictor_kernel,
        out_shape=jax.ShapeDtypeStruct((Bp, Op), jnp.float32),
        in_specs=[pl.BlockSpec(memory_space=vmem)] * 6,   # whole arrays, loaded once
        out_specs=pl.BlockSpec(memory_space=vmem),
        scratch_shapes=[pltpu.VMEM((T * Bp, 4 * H), jnp.float32)],
        # NOTE: at large T*B, set pltpu.CompilerParams(vmem_limit_bytes=...) and
        # chunk Phase 1 over time; unnecessary at these shapes.
    )(x_flat, wih_t, whh_t, bias, wout_pad, bout_pad)
    return out[:B, :output_dim]


def init_params(key, input_dim, hidden_dim, output_dim):
    """Raw PyTorch-layout params, U(-1/sqrt(H), 1/sqrt(H)) like nn.LSTM/Linear."""
    k1, k2, k3, k4, k5, k6 = jax.random.split(key, 6)
    s = 1.0 / math.sqrt(hidden_dim)
    u = lambda k, shape: jax.random.uniform(k, shape, jnp.float32, -s, s)

    w_ih = u(k1, (4 * hidden_dim, input_dim))    # PyTorch weight_ih_l0 [i,f,g,o]
    w_hh = u(k2, (4 * hidden_dim, hidden_dim))   # PyTorch weight_hh_l0
    b_ih = u(k3, (4 * hidden_dim,))
    b_hh = u(k4, (4 * hidden_dim,))
    w_out = u(k5, (output_dim, hidden_dim))      # nn.Linear weight
    b_out = u(k6, (output_dim,))
    return (w_ih, w_hh, b_ih, b_hh, w_out, b_out)


def prepare_kernel_params(raw_params):
    """Transpose, gate-permute to [i,f,o|g], cast matmul weights to bf16, pad head."""
    w_ih, w_hh, b_ih, b_hh, w_out, b_out = raw_params
    H = w_hh.shape[1]
    O = w_out.shape[0]

    # PyTorch gate order along 4H is [i, f, g, o]; reorder columns to [i, f, o, g]
    # so sigmoid gates are lane-contiguous and tanh gets the trailing H lanes.
    perm = jnp.concatenate([jnp.arange(0, H), jnp.arange(H, 2 * H),
                            jnp.arange(3 * H, 4 * H), jnp.arange(2 * H, 3 * H)])

    wih_t = jnp.transpose(w_ih)[:, perm].astype(jnp.bfloat16)        # (D, 4H)
    whh_t = jnp.transpose(w_hh)[:, perm].astype(jnp.bfloat16)        # (H, 4H)
    bias = (b_ih + b_hh)[perm].reshape(1, 4 * H).astype(jnp.float32)

    Op = max(LANE, ((O + LANE - 1) // LANE) * LANE)
    wout_pad = jnp.zeros((H, Op), jnp.bfloat16).at[:, :O].set(
        jnp.transpose(w_out).astype(jnp.bfloat16))                   # (H, Op)
    bout_pad = jnp.zeros((1, Op), jnp.float32).at[:, :O].set(b_out)  # (1, Op)
    return (wih_t, whh_t, bias, wout_pad, bout_pad)


def _reference_forward(x, raw_params, matmul_dtype=jnp.float32):
    """Pure-JAX reference with PyTorch LSTM semantics (gate order [i,f,g,o]).

    matmul_dtype=bf16 mirrors the kernel's mixed-precision scheme exactly
    (bf16 operands, f32 accumulation, f32 gate math).
    """
    w_ih, w_hh, b_ih, b_hh, w_out, b_out = raw_params
    H = w_hh.shape[1]
    wih_t = jnp.transpose(w_ih).astype(matmul_dtype)
    whh_t = jnp.transpose(w_hh).astype(matmul_dtype)
    wout_t = jnp.transpose(w_out).astype(matmul_dtype)
    bias = (b_ih + b_hh).astype(jnp.float32)

    B = x.shape[0]
    h = jnp.zeros((B, H), jnp.float32)
    c = jnp.zeros((B, H), jnp.float32)

    def step(carry, x_t):
        h, c = carry
        g = (jnp.dot(x_t.astype(matmul_dtype), wih_t,
                     preferred_element_type=jnp.float32)
             + jnp.dot(h.astype(matmul_dtype), whh_t,
                       preferred_element_type=jnp.float32)
             + bias)
        i = jax.nn.sigmoid(g[:, 0 * H:1 * H])
        f = jax.nn.sigmoid(g[:, 1 * H:2 * H])
        gg = jnp.tanh(g[:, 2 * H:3 * H])
        o = jax.nn.sigmoid(g[:, 3 * H:4 * H])
        c = f * c + i * gg
        h = o * jnp.tanh(c)
        return (h, c), None

    (h, c), _ = jax.lax.scan(step, (h, c), jnp.transpose(x, (1, 0, 2)))
    return (jnp.dot(h.astype(matmul_dtype), wout_t,
                    preferred_element_type=jnp.float32) + b_out)


if __name__ == "__main__":
    B, T = 2, 8            # batch, sequence length
    INPUT_DIM = 4
    HIDDEN_DIM = 32
    OUTPUT_DIM = 4

    key = jax.random.PRNGKey(0)
    kx, kp = jax.random.split(key)
    x = jax.random.normal(kx, (B, T, INPUT_DIM), jnp.float32)

    raw_params = init_params(kp, INPUT_DIM, HIDDEN_DIM, OUTPUT_DIM)
    kernel_params = prepare_kernel_params(raw_params)

    y = predictor_forward(x, kernel_params, OUTPUT_DIM)
    y = jax.block_until_ready(y)
    assert y.shape == (B, OUTPUT_DIM)

    # Matched mixed-precision reference (same bf16-operand / f32-accumulate
    # scheme as the kernel): should agree tightly.
    y_ref_bf16 = _reference_forward(x, raw_params, matmul_dtype=jnp.bfloat16)
    assert jnp.allclose(y, y_ref_bf16, atol=2e-3, rtol=2e-3), \
        "mismatch vs matched-precision JAX reference"

    # Full-f32 PyTorch-semantics reference: loose tolerance covers the expected
    # bf16 quantization error of the MXU operands.
    y_ref_f32 = _reference_forward(x, raw_params, matmul_dtype=jnp.float32)
    assert jnp.allclose(y, y_ref_f32, atol=5e-2, rtol=5e-2), \
        "mismatch vs f32 JAX reference"

    print("KERNEL_OK")
</pallas_src>

<mosaic_0001>
module attributes {stable_mosaic.version = 11 : i64} {
  func.func @_lstm_predictor_kernel(%arg0: memref<64x4xbf16, #tpu.memory_space<vmem>>, %arg1: memref<4x128xbf16, #tpu.memory_space<vmem>>, %arg2: memref<32x128xbf16, #tpu.memory_space<vmem>>, %arg3: memref<1x128xf32, #tpu.memory_space<vmem>>, %arg4: memref<32x128xbf16, #tpu.memory_space<vmem>>, %arg5: memref<1x128xf32, #tpu.memory_space<vmem>>, %arg6: memref<8x128xf32, #tpu.memory_space<vmem>>, %arg7: memref<64x128xf32, #tpu.memory_space<vmem>>) attributes {dimension_semantics = [], scalar_prefetch = 0 : i64, scratch_operands = 1 : i64, tpu.core_type = #tpu.core_type<tc>} {
    %c0 = arith.constant 0 : index
    %c0_0 = arith.constant 0 : index
    %0 = vector.load %arg0[%c0, %c0_0] : memref<64x4xbf16, #tpu.memory_space<vmem>>, vector<64x4xbf16>
    %c0_1 = arith.constant 0 : index
    %c0_2 = arith.constant 0 : index
    %1 = vector.load %arg1[%c0_1, %c0_2] : memref<4x128xbf16, #tpu.memory_space<vmem>>, vector<4x128xbf16>
    %cst = arith.constant dense<0.000000e+00> : vector<64x128xf32>
    %2 = tpu.matmul %0, %1, %cst {dimension_numbers = #tpu.dot_dimension_numbers<[1], [0], [0], [1], [0, 0, 1, 1], [], []>} : vector<64x4xbf16>, vector<4x128xbf16>, vector<64x128xf32> -> vector<64x128xf32>
    %c0_3 = arith.constant 0 : index
    %c0_4 = arith.constant 0 : index
    %3 = vector.load %arg3[%c0_3, %c0_4] : memref<1x128xf32, #tpu.memory_space<vmem>>, vector<1x128xf32>
    %4 = vector.broadcast %3 : vector<1x128xf32> to vector<64x128xf32>
    %5 = arith.addf %2, %4 : vector<64x128xf32>
    %c0_5 = arith.constant 0 : index
    %c0_6 = arith.constant 0 : index
    %6 = vector.load %arg7[%c0_5, %c0_6] : memref<64x128xf32, #tpu.memory_space<vmem>>, vector<64x128xf32>
    tpu.vector_store %arg7[%c0_5, %c0_6], %5 {strides = array<i32>} : memref<64x128xf32, #tpu.memory_space<vmem>>, vector<64x128xf32>,
    %c0_7 = arith.constant 0 : index
    %c0_8 = arith.constant 0 : index
    %7 = vector.load %arg2[%c0_7, %c0_8] : memref<32x128xbf16, #tpu.memory_space<vmem>>, vector<32x128xbf16>
    %cst_9 = arith.constant 0.000000e+00 : f32
    %8 = vector.broadcast %cst_9 : f32 to vector<8x32xf32>
    %cst_10 = arith.constant 0.000000e+00 : f32
    %9 = vector.broadcast %cst_10 : f32 to vector<8x32xf32>
    %c0_11 = arith.constant 0 : index
    %c0_12 = arith.constant 0 : index
    %10 = vector.load %arg7[%c0_11, %c0_12] : memref<64x128xf32, #tpu.memory_space<vmem>>, vector<8x128xf32>
    %11 = arith.truncf %8 : vector<8x32xf32> to vector<8x32xbf16>
    %cst_13 = arith.constant dense<0.000000e+00> : vector<8x128xf32>
    %12 = tpu.matmul %11, %7, %cst_13 {dimension_numbers = #tpu.dot_dimension_numbers<[1], [0], [0], [1], [0, 0, 1, 1], [], []>} : vector<8x32xbf16>, vector<32x128xbf16>, vector<8x128xf32> -> vector<8x128xf32>
    %13 = arith.addf %10, %12 : vector<8x128xf32>
    %14 = vector.extract_strided_slice %13 {offsets = [0, 0], sizes = [8, 96], strides = [1, 1]} : vector<8x128xf32> to vector<8x96xf32>
    %15 = arith.negf %14 : vector<8x96xf32>
    %16 = math.exp %15 : vector<8x96xf32>
    %cst_14 = arith.constant 1.000000e+00 : f32
    %17 = vector.broadcast %cst_14 : f32 to vector<8x96xf32>
    %18 = arith.addf %17, %16 : vector<8x96xf32>
    %19 = arith.divf %17, %18 : vector<8x96xf32>
    %20 = vector.extract_strided_slice %13 {offsets = [0, 96], sizes = [8, 32], strides = [1, 1]} : vector<8x128xf32> to vector<8x32xf32>
    %21 = math.tanh %20 : vector<8x32xf32>
    %22 = vector.extract_strided_slice %19 {offsets = [0, 0], sizes = [8, 32], strides = [1, 1]} : vector<8x96xf32> to vector<8x32xf32>
    %23 = vector.extract_strided_slice %19 {offsets = [0, 32], sizes = [8, 32], strides = [1, 1]} : vector<8x96xf32> to vector<8x32xf32>
    %24 = vector.extract_strided_slice %19 {offsets = [0, 64], sizes = [8, 32], strides = [1, 1]} : vector<8x96xf32> to vector<8x32xf32>
    %25 = arith.mulf %23, %9 : vector<8x32xf32>
    %26 = arith.mulf %22, %21 : vector<8x32xf32>
    %27 = arith.addf %25, %26 : vector<8x32xf32>
    %28 = math.tanh %27 : vector<8x32xf32>
    %29 = arith.mulf %24, %28 : vector<8x32xf32>
    %c8 = arith.constant 8 : index
    %c0_15 = arith.constant 0 : index
    %30 = vector.load %arg7[%c8, %c0_15] : memref<64x128xf32, #tpu.memory_space<vmem>>, vector<8x128xf32>
    %31 = arith.truncf %29 : vector<8x32xf32> to vector<8x32xbf16>
    %cst_16 = arith.constant dense<0.000000e+00> : vector<8x128xf32>
    %32 = tpu.matmul %31, %7, %cst_16 {dimension_numbers = #tpu.dot_dimension_numbers<[1], [0], [0], [1], [0, 0, 1, 1], [], []>} : vector<8x32xbf16>, vector<32x128xbf16>, vector<8x128xf32> -> vector<8x128xf32>
    %33 = arith.addf %30, %32 : vector<8x128xf32>
    %34 = vector.extract_strided_slice %33 {offsets = [0, 0], sizes = [8, 96], strides = [1, 1]} : vector<8x128xf32> to vector<8x96xf32>
    %35 = arith.negf %34 : vector<8x96xf32>
    %36 = math.exp %35 : vector<8x96xf32>
    %cst_17 = arith.constant 1.000000e+00 : f32
    %37 = vector.broadcast %cst_17 : f32 to vector<8x96xf32>
    %38 = arith.addf %37, %36 : vector<8x96xf32>
    %39 = arith.divf %37, %38 : vector<8x96xf32>
    %40 = vector.extract_strided_slice %33 {offsets = [0, 96], sizes = [8, 32], strides = [1, 1]} : vector<8x128xf32> to vector<8x32xf32>
    %41 = math.tanh %40 : vector<8x32xf32>
    %42 = vector.extract_strided_slice %39 {offsets = [0, 0], sizes = [8, 32], strides = [1, 1]} : vector<8x96xf32> to vector<8x32xf32>
    %43 = vector.extract_strided_slice %39 {offsets = [0, 32], sizes = [8, 32], strides = [1, 1]} : vector<8x96xf32> to vector<8x32xf32>
    %44 = vector.extract_strided_slice %39 {offsets = [0, 64], sizes = [8, 32], strides = [1, 1]} : vector<8x96xf32> to vector<8x32xf32>
    %45 = arith.mulf %43, %27 : vector<8x32xf32>
    %46 = arith.mulf %42, %41 : vector<8x32xf32>
    %47 = arith.addf %45, %46 : vector<8x32xf32>
    %48 = math.tanh %47 : vector<8x32xf32>
    %49 = arith.mulf %44, %48 : vector<8x32xf32>
    %c16 = arith.constant 16 : index
    %c0_18 = arith.constant 0 : index
    %50 = vector.load %arg7[%c16, %c0_18] : memref<64x128xf32, #tpu.memory_space<vmem>>, vector<8x128xf32>
    %51 = arith.truncf %49 : vector<8x32xf32> to vector<8x32xbf16>
    %cst_19 = arith.constant dense<0.000000e+00> : vector<8x128xf32>
    %52 = tpu.matmul %51, %7, %cst_19 {dimension_numbers = #tpu.dot_dimension_numbers<[1], [0], [0], [1], [0, 0, 1, 1], [], []>} : vector<8x32xbf16>, vector<32x128xbf16>, vector<8x128xf32> -> vector<8x128xf32>
    %53 = arith.addf %50, %52 : vector<8x128xf32>
    %54 = vector.extract_strided_slice %53 {offsets = [0, 0], sizes = [8, 96], strides = [1, 1]} : vector<8x128xf32> to vector<8x96xf32>
    %55 = arith.negf %54 : vector<8x96xf32>
    %56 = math.exp %55 : vector<8x96xf32>
    %cst_20 = arith.constant 1.000000e+00 : f32
    %57 = vector.broadcast %cst_20 : f32 to vector<8x96xf32>
    %58 = arith.addf %57, %56 : vector<8x96xf32>
    %59 = arith.divf %57, %58 : vector<8x96xf32>
    %60 = vector.extract_strided_slice %53 {offsets = [0, 96], sizes = [8, 32], strides = [1, 1]} : vector<8x128xf32> to vector<8x32xf32>
    %61 = math.tanh %60 : vector<8x32xf32>
    %62 = vector.extract_strided_slice %59 {offsets = [0, 0], sizes = [8, 32], strides = [1, 1]} : vector<8x96xf32> to vector<8x32xf32>
    %63 = vector.extract_strided_slice %59 {offsets = [0, 32], sizes = [8, 32], strides = [1, 1]} : vector<8x96xf32> to vector<8x32xf32>
    %64 = vector.extract_strided_slice %59 {offsets = [0, 64], sizes = [8, 32], strides = [1, 1]} : vector<8x96xf32> to vector<8x32xf32>
    %65 = arith.mulf %63, %47 : vector<8x32xf32>
    %66 = arith.mulf %62, %61 : vector<8x32xf32>
    %67 = arith.addf %65, %66 : vector<8x32xf32>
    %68 = math.tanh %67 : vector<8x32xf32>
    %69 = arith.mulf %64, %68 : vector<8x32xf32>
    %c24 = arith.constant 24 : index
    %c0_21 = arith.constant 0 : index
    %70 = vector.load %arg7[%c24, %c0_21] : memref<64x128xf32, #tpu.memory_space<vmem>>, vector<8x128xf32>
    %71 = arith.truncf %69 : vector<8x32xf32> to vector<8x32xbf16>
    %cst_22 = arith.constant dense<0.000000e+00> : vector<8x128xf32>
    %72 = tpu.matmul %71, %7, %cst_22 {dimension_numbers = #tpu.dot_dimension_numbers<[1], [0], [0], [1], [0, 0, 1, 1], [], []>} : vector<8x32xbf16>, vector<32x128xbf16>, vector<8x128xf32> -> vector<8x128xf32>
    %73 = arith.addf %70, %72 : vector<8x128xf32>
    %74 = vector.extract_strided_slice %73 {offsets = [0, 0], sizes = [8, 96], strides = [1, 1]} : vector<8x128xf32> to vector<8x96xf32>
    %75 = arith.negf %74 : vector<8x96xf32>
    %76 = math.exp %75 : vector<8x96xf32>
    %cst_23 = arith.constant 1.000000e+00 : f32
    %77 = vector.broadcast %cst_23 : f32 to vector<8x96xf32>
    %78 = arith.addf %77, %76 : vector<8x96xf32>
    %79 = arith.divf %77, %78 : vector<8x96xf32>
    %80 = vector.extract_strided_slice %73 {offsets = [0, 96], sizes = [8, 32], strides = [1, 1]} : vector<8x128xf32> to vector<8x32xf32>
    %81 = math.tanh %80 : vector<8x32xf32>
    %82 = vector.extract_strided_slice %79 {offsets = [0, 0], sizes = [8, 32], strides = [1, 1]} : vector<8x96xf32> to vector<8x32xf32>
    %83 = vector.extract_strided_slice %79 {offsets = [0, 32], sizes = [8, 32], strides = [1, 1]} : vector<8x96xf32> to vector<8x32xf32>
    %84 = vector.extract_strided_slice %79 {offsets = [0, 64], sizes = [8, 32], strides = [1, 1]} : vector<8x96xf32> to vector<8x32xf32>
    %85 = arith.mulf %83, %67 : vector<8x32xf32>
    %86 = arith.mulf %82, %81 : vector<8x32xf32>
    %87 = arith.addf %85, %86 : vector<8x32xf32>
    %88 = math.tanh %87 : vector<8x32xf32>
    %89 = arith.mulf %84, %88 : vector<8x32xf32>
    %c32 = arith.constant 32 : index
    %c0_24 = arith.constant 0 : index
    %90 = vector.load %arg7[%c32, %c0_24] : memref<64x128xf32, #tpu.memory_space<vmem>>, vector<8x128xf32>
    %91 = arith.truncf %89 : vector<8x32xf32> to vector<8x32xbf16>
    %cst_25 = arith.constant dense<0.000000e+00> : vector<8x128xf32>
    %92 = tpu.matmul %91, %7, %cst_25 {dimension_numbers = #tpu.dot_dimension_numbers<[1], [0], [0], [1], [0, 0, 1, 1], [], []>} : vector<8x32xbf16>, vector<32x128xbf16>, vector<8x128xf32> -> vector<8x128xf32>
    %93 = arith.addf %90, %92 : vector<8x128xf32>
    %94 = vector.extract_strided_slice %93 {offsets = [0, 0], sizes = [8, 96], strides = [1, 1]} : vector<8x128xf32> to vector<8x96xf32>
    %95 = arith.negf %94 : vector<8x96xf32>
    %96 = math.exp %95 : vector<8x96xf32>
    %cst_26 = arith.constant 1.000000e+00 : f32
    %97 = vector.broadcast %cst_26 : f32 to vector<8x96xf32>
    %98 = arith.addf %97, %96 : vector<8x96xf32>
    %99 = arith.divf %97, %98 : vector<8x96xf32>
    %100 = vector.extract_strided_slice %93 {offsets = [0, 96], sizes = [8, 32], strides = [1, 1]} : vector<8x128xf32> to vector<8x32xf32>
    %101 = math.tanh %100 : vector<8x32xf32>
    %102 = vector.extract_strided_slice %99 {offsets = [0, 0], sizes = [8, 32], strides = [1, 1]} : vector<8x96xf32> to vector<8x32xf32>
    %103 = vector.extract_strided_slice %99 {offsets = [0, 32], sizes = [8, 32], strides = [1, 1]} : vector<8x96xf32> to vector<8x32xf32>
    %104 = vector.extract_strided_slice %99 {offsets = [0, 64], sizes = [8, 32], strides = [1, 1]} : vector<8x96xf32> to vector<8x32xf32>
    %105 = arith.mulf %103, %87 : vector<8x32xf32>
    %106 = arith.mulf %102, %101 : vector<8x32xf32>
    %107 = arith.addf %105, %106 : vector<8x32xf32>
    %108 = math.tanh %107 : vector<8x32xf32>
    %109 = arith.mulf %104, %108 : vector<8x32xf32>
    %c40 = arith.constant 40 : index
    %c0_27 = arith.constant 0 : index
    %110 = vector.load %arg7[%c40, %c0_27] : memref<64x128xf32, #tpu.memory_space<vmem>>, vector<8x128xf32>
    %111 = arith.truncf %109 : vector<8x32xf32> to vector<8x32xbf16>
    %cst_28 = arith.constant dense<0.000000e+00> : vector<8x128xf32>
    %112 = tpu.matmul %111, %7, %cst_28 {dimension_numbers = #tpu.dot_dimension_numbers<[1], [0], [0], [1], [0, 0, 1, 1], [], []>} : vector<8x32xbf16>, vector<32x128xbf16>, vector<8x128xf32> -> vector<8x128xf32>
    %113 = arith.addf %110, %112 : vector<8x128xf32>
    %114 = vector.extract_strided_slice %113 {offsets = [0, 0], sizes = [8, 96], strides = [1, 1]} : vector<8x128xf32> to vector<8x96xf32>
    %115 = arith.negf %114 : vector<8x96xf32>
    %116 = math.exp %115 : vector<8x96xf32>
    %cst_29 = arith.constant 1.000000e+00 : f32
    %117 = vector.broadcast %cst_29 : f32 to vector<8x96xf32>
    %118 = arith.addf %117, %116 : vector<8x96xf32>
    %119 = arith.divf %117, %118 : vector<8x96xf32>
    %120 = vector.extract_strided_slice %113 {offsets = [0, 96], sizes = [8, 32], strides = [1, 1]} : vector<8x128xf32> to vector<8x32xf32>
    %121 = math.tanh %120 : vector<8x32xf32>
    %122 = vector.extract_strided_slice %119 {offsets = [0, 0], sizes = [8, 32], strides = [1, 1]} : vector<8x96xf32> to vector<8x32xf32>
    %123 = vector.extract_strided_slice %119 {offsets = [0, 32], sizes = [8, 32], strides = [1, 1]} : vector<8x96xf32> to vector<8x32xf32>
    %124 = vector.extract_strided_slice %119 {offsets = [0, 64], sizes = [8, 32], strides = [1, 1]} : vector<8x96xf32> to vector<8x32xf32>
    %125 = arith.mulf %123, %107 : vector<8x32xf32>
    %126 = arith.mulf %122, %121 : vector<8x32xf32>
    %127 = arith.addf %125, %126 : vector<8x32xf32>
    %128 = math.tanh %127 : vector<8x32xf32>
    %129 = arith.mulf %124, %128 : vector<8x32xf32>
    %c48 = arith.constant 48 : index
    %c0_30 = arith.constant 0 : index
    %130 = vector.load %arg7[%c48, %c0_30] : memref<64x128xf32, #tpu.memory_space<vmem>>, vector<8x128xf32>
    %131 = arith.truncf %129 : vector<8x32xf32> to vector<8x32xbf16>
    %cst_31 = arith.constant dense<0.000000e+00> : vector<8x128xf32>
    %132 = tpu.matmul %131, %7, %cst_31 {dimension_numbers = #tpu.dot_dimension_numbers<[1], [0], [0], [1], [0, 0, 1, 1], [], []>} : vector<8x32xbf16>, vector<32x128xbf16>, vector<8x128xf32> -> vector<8x128xf32>
    %133 = arith.addf %130, %132 : vector<8x128xf32>
    %134 = vector.extract_strided_slice %133 {offsets = [0, 0], sizes = [8, 96], strides = [1, 1]} : vector<8x128xf32> to vector<8x96xf32>
    %135 = arith.negf %134 : vector<8x96xf32>
    %136 = math.exp %135 : vector<8x96xf32>
    %cst_32 = arith.constant 1.000000e+00 : f32
    %137 = vector.broadcast %cst_32 : f32 to vector<8x96xf32>
    %138 = arith.addf %137, %136 : vector<8x96xf32>
    %139 = arith.divf %137, %138 : vector<8x96xf32>
    %140 = vector.extract_strided_slice %133 {offsets = [0, 96], sizes = [8, 32], strides = [1, 1]} : vector<8x128xf32> to vector<8x32xf32>
    %141 = math.tanh %140 : vector<8x32xf32>
    %142 = vector.extract_strided_slice %139 {offsets = [0, 0], sizes = [8, 32], strides = [1, 1]} : vector<8x96xf32> to vector<8x32xf32>
    %143 = vector.extract_strided_slice %139 {offsets = [0, 32], sizes = [8, 32], strides = [1, 1]} : vector<8x96xf32> to vector<8x32xf32>
    %144 = vector.extract_strided_slice %139 {offsets = [0, 64], sizes = [8, 32], strides = [1, 1]} : vector<8x96xf32> to vector<8x32xf32>
    %145 = arith.mulf %143, %127 : vector<8x32xf32>
    %146 = arith.mulf %142, %141 : vector<8x32xf32>
    %147 = arith.addf %145, %146 : vector<8x32xf32>
    %148 = math.tanh %147 : vector<8x32xf32>
    %149 = arith.mulf %144, %148 : vector<8x32xf32>
    %c56 = arith.constant 56 : index
    %c0_33 = arith.constant 0 : index
    %150 = vector.load %arg7[%c56, %c0_33] : memref<64x128xf32, #tpu.memory_space<vmem>>, vector<8x128xf32>
    %151 = arith.truncf %149 : vector<8x32xf32> to vector<8x32xbf16>
    %cst_34 = arith.constant dense<0.000000e+00> : vector<8x128xf32>
    %152 = tpu.matmul %151, %7, %cst_34 {dimension_numbers = #tpu.dot_dimension_numbers<[1], [0], [0], [1], [0, 0, 1, 1], [], []>} : vector<8x32xbf16>, vector<32x128xbf16>, vector<8x128xf32> -> vector<8x128xf32>
    %153 = arith.addf %150, %152 : vector<8x128xf32>
    %154 = vector.extract_strided_slice %153 {offsets = [0, 0], sizes = [8, 96], strides = [1, 1]} : vector<8x128xf32> to vector<8x96xf32>
    %155 = arith.negf %154 : vector<8x96xf32>
    %156 = math.exp %155 : vector<8x96xf32>
    %cst_35 = arith.constant 1.000000e+00 : f32
    %157 = vector.broadcast %cst_35 : f32 to vector<8x96xf32>
    %158 = arith.addf %157, %156 : vector<8x96xf32>
    %159 = arith.divf %157, %158 : vector<8x96xf32>
    %160 = vector.extract_strided_slice %153 {offsets = [0, 96], sizes = [8, 32], strides = [1, 1]} : vector<8x128xf32> to vector<8x32xf32>
    %161 = math.tanh %160 : vector<8x32xf32>
    %162 = vector.extract_strided_slice %159 {offsets = [0, 0], sizes = [8, 32], strides = [1, 1]} : vector<8x96xf32> to vector<8x32xf32>
    %163 = vector.extract_strided_slice %159 {offsets = [0, 32], sizes = [8, 32], strides = [1, 1]} : vector<8x96xf32> to vector<8x32xf32>
    %164 = vector.extract_strided_slice %159 {offsets = [0, 64], sizes = [8, 32], strides = [1, 1]} : vector<8x96xf32> to vector<8x32xf32>
    %165 = arith.mulf %163, %147 : vector<8x32xf32>
    %166 = arith.mulf %162, %161 : vector<8x32xf32>
    %167 = arith.addf %165, %166 : vector<8x32xf32>
    %168 = math.tanh %167 : vector<8x32xf32>
    %169 = arith.mulf %164, %168 : vector<8x32xf32>
    %170 = arith.truncf %169 : vector<8x32xf32> to vector<8x32xbf16>
    %c0_36 = arith.constant 0 : index
    %c0_37 = arith.constant 0 : index
    %171 = vector.load %arg4[%c0_36, %c0_37] : memref<32x128xbf16, #tpu.memory_space<vmem>>, vector<32x128xbf16>
    %cst_38 = arith.constant dense<0.000000e+00> : vector<8x128xf32>
    %172 = tpu.matmul %170, %171, %cst_38 {dimension_numbers = #tpu.dot_dimension_numbers<[1], [0], [0], [1], [0, 0, 1, 1], [], []>} : vector<8x32xbf16>, vector<32x128xbf16>, vector<8x128xf32> -> vector<8x128xf32>
    %c0_39 = arith.constant 0 : index
    %c0_40 = arith.constant 0 : index
    %173 = vector.load %arg5[%c0_39, %c0_40] : memref<1x128xf32, #tpu.memory_space<vmem>>, vector<1x128xf32>
    %174 = vector.broadcast %173 : vector<1x128xf32> to vector<8x128xf32>
    %175 = arith.addf %172, %174 : vector<8x128xf32>
    %c0_41 = arith.constant 0 : index
    %c0_42 = arith.constant 0 : index
    %176 = vector.load %arg6[%c0_41, %c0_42] : memref<8x128xf32, #tpu.memory_space<vmem>>, vector<8x128xf32>
    tpu.vector_store %arg6[%c0_41, %c0_42], %175 {strides = array<i32>} : memref<8x128xf32, #tpu.memory_space<vmem>>, vector<8x128xf32>,
    return
  }
}

</mosaic_0001>

<bundles_post_ra>
// kernel: tpu_custom_call.1
= control target key start
LH: loop header
LB: loop body
LE: loop exit
PB: predicated region body
PF: predicated region fallthrough
CT: control target
= control target key end

     0   :  { %vm74_vm0 = vcmask 1041408   ;;  %v1080_v2 = vmov 0.0   ;;  %vm61_vm1 = vcmask 31744   ;;  %vm1081_vm2 = vmmov 0   ;;  %s1294_s0 = inlined_call_operand.vmem [shape: bf16[64,4], index: 0, kind: input, shape index: {}]   ;;  %s1295_s1 = inlined_call_operand.vmem [shape: bf16[4,128], index: 1, kind: input, shape index: {}]   ;;  %s1296_s2 = inlined_call_operand.vmem [shape: bf16[32,128], index: 2, kind: input, shape index: {}]   ;;  %s1297_s3 = inlined_call_operand.vmem [shape: f32[1,128], index: 3, kind: input, shape index: {}]   ;;  %s1298_s4 = inlined_call_operand.vmem [shape: bf16[32,128], index: 4, kind: input, shape index: {}]   ;;  %s1299_s5 = inlined_call_operand.vmem [shape: f32[1,128], index: 5, kind: input, shape index: {}]   ;;  %s1300_s6 = inlined_call_operand.hbm [shape: f32[8,128], index: 6, kind: output, shape index: {}]  }
   0x1   :  { %v33_v0 = vld [vmem:[%s1295_s1] sm:$0x3]  ;;  %905 = vmatprep.subr.bf16.mxu1 %v1080_v2  ;;  %v986_v5 = vld [vmem:[%s1294_s0 + $0x8] sm:$0xff]   ;;  %909 = vmatprep.mubr.msk.bf16.mxu1 %vm1081_vm2, %v1080_v2 }
   0x2   :  { %977 = vmatprep.subr.msk.bf16.mxu0 %vm74_vm0, %v33_v0  ;;  %v76_v1 = vsel %vm74_vm0, %v33_v0, 0  ;;  %v1128_v3 = vld [vmem:[%s1296_s2] sm:$0xff]   ;;  %v1143_v6 = vld [vmem:[%s1296_s2 + $0x8] sm:$0xff]  }
   0x3   :  { %896 = vmatpush3.bf16.msra.mxu0 %v76_v1  ;;  %v985_v4 = vld [vmem:[%s1294_s0] sm:$0xff]   ;;  %906 = vmatpush3.bf16.msra.mxu1 %v1128_v3 }
   0x4   :  { %921 = vmatprep.subr.bf16.mxu0 %v1080_v2  ;;  %897 = vmatprep.mubr.msk.bf16.mxu0 %vm61_vm1, %v985_v4 }
   0x5   :  { %907 = vmatprep.subr.bf16.mxu1 %v1080_v2 }
   0x6   :  { %898 = vmatmul.mubr.msk.bf16.vlgmr.msra.gmra.mrb[0].mxu0 %vm61_vm1, %v986_v5 }
   0x7   :  { %922 = vmatpush3.bf16.msra.mxu0 %v1128_v3  ;;  %908 = vmatpush3.bf16.msra.mxu1 %v1143_v6 }
   0x8   :  { %923 = vmatprep.subr.bf16.mxu0 %v1080_v2 }
   0x9   :  { %11 = vsyncpa [#allocation4], 0  ;;  %913 = vmatprep.subr.bf16.mxu1 %v1080_v2  ;;  %v1082_v7 = vmov 0   ;;  %v1163_v8 = vld [vmem:[%s1297_s3] ss:$0 sm:$0xff]  ;;  %s1083_s7 = smov 32  }
   0xa   :  { %910 = vmatmul.mubr.bf16.vlgmr.msra.gmra.mrb[0].mxu1 %v1082_v7  ;;  %s1084_s3 = smov 64   ;;  %vm168_vm3 = vcmask 261120   ;;  %v988_v50 = vld [vmem:[%s1294_s0 + $0x10] sm:$0xff]   ;;  %v989_v51 = vld [vmem:[%s1294_s0 + $0x18] sm:$0xff]   ;;  %s1085_s17 = smov [#allocation3]  }
   0xb   :  { %924 = vmatpush3.bf16.msra.mxu0 %v1143_v6  ;;  %914 = vmatpush3.bf16.msra.mxu1 %v1128_v3 }
   0xc   :  { %917 = vmatprep.mubr.msk.bf16.mxu1 %vm1081_vm2, %v1080_v2  ;;  %915 = vmatprep.subr.bf16.mxu1 %v1080_v2 }
   0xd   :  { %937 = vmatprep.subr.bf16.mxu0 %v1080_v2  ;;  %901 = vmatprep.mubr.msk.bf16.mxu0 %vm61_vm1, %v988_v50 }
   0xe   :  { %902 = vmatmul.mubr.msk.bf16.gmra.mrb[4].mxu0 %vm61_vm1, %v989_v51 }
   0xf   :  { %916 = vmatpush3.bf16.msra.mxu1 %v1143_v6  ;;  %925 = vmatprep.mubr.msk.bf16.mxu0 %vm1081_vm2, %v1080_v2 }
  0x10   :  { %929 = vmatprep.subr.bf16.mxu1 %v1080_v2 }
  0xd9   :  { %v1165_v9 = vpop.f32.mrb[0].mxu0 }
  0xda   :  { %v112_v10 = vpop.f32.mrb[1].mxu0  ;;  %v121_v61 = vadd.f32 %v1165_v9, %v1163_v8 }
  0xdb   :  { %v113_v11 = vadd.f32 %v1163_v8, %v112_v10  ;;  %v1168_v12 = vpop.f32.mrb[2].mxu0 }
  0xdc   :  { %v115_v13 = vpop.f32.mrb[3].mxu0 }
  0xdd   :  { %v206_v14 = vpop.f32.mrb[0].mxu1  ;;  %v116_v34 = vadd.f32 %v1163_v8, %v115_v13 }
  0xde   :  { %v212_v15 = vadd.f32 %v206_v14, %v113_v11  ;;  %v911_v16 = vpop.f32.mrb[1].mxu1 }
  0xdf   :  { %v209_v17 = vpop.f32.mrb[2].mxu1 }
  0xe0   :  { %992 = vtanh.f32 %v212_v15  ;;  %v912_v18 = vpop.f32.mrb[3].mxu1  ;;  %v844_v20 = vmul.f32 -1.442695, %v212_v15 }
  0xe1   :  { %v1196_v56 = vpop.f32.mrb[4].mxu0 }
  0xe2   :  { %994 = vpow2.f32 %v844_v20  ;;  %v1198_v57 = vpop.f32.mrb[5].mxu0 }
  0xe3   :  { %v1200_v58 = vpop.f32.mrb[6].mxu0 }
  0xe4   :  { %v1202_v59 = vpop.f32.mrb[7].mxu0 }
  0xea   :  { %v993_v19 = vpop.eup %992 }
  0xeb   :  { %222 = vrot.lane.b32.xlu0 %v993_v19, %s1083_s7 }
  0xec   :  { %v995_v21 = vpop.eup %994 }
  0xed   :  { %v216_v22 = vadd.f32 1.0, %v995_v21 }
  0xef   :  { %996 = vrcp.f32 %v216_v22 }
  0xf9   :  { %v997_v23 = vpop.eup %996 }
  0xfa   :  { %v220_v26 = vmul.f32 0.0, %v997_v23 }
 0x15d   :  { %v223_v24 = vpop.permute.xlu0 %222 }
 0x15e   :  { %v225_v25 = vmul.f32 %v997_v23, %v223_v24 }
 0x160   :  { %227 = vrot.lane.b32.xlu0 %v225_v25, %s1083_s7 }
 0x1d2   :  { %v228_v27 = vpop.permute.xlu0 %227 }
 0x1d3   :  { %v230_v28 = vadd.f32 %v228_v27, %v220_v26 }
 0x1d5   :  { %998 = vtanh.f32 %v230_v28 }
 0x1df   :  { %v999_v29 = vpop.eup %998 }
 0x1e0   :  { %233 = vrot.lane.b32.xlu1 %v999_v29, %s1083_s7 }
 0x252   :  { %v234_v30 = vpop.permute.xlu1 %233 }
 0x253   :  { %v236_v31 = vmul.f32 %v997_v23, %v234_v30  ;;  %v124_v23 = vadd.f32 %v1168_v12, %v1163_v8 }
 0x255   :  { %v238_v32 = vpack.c.bf16 %v236_v31, %v236_v31 }
 0x257   :  { %240 = vrot.lane.b32.xlu1 %v238_v32, %s1084_s3 }
 0x2c9   :  { %v241_v33 = vpop.permute.xlu1 %240 }
 0x2ca   :  { %918 = vmatmul.mubr.msk.bf16.vlgmr.msra.gmra.mrb[4].mxu1 %vm168_vm3, %v241_v33 }
 0x2cb   :  { %930 = vmatpush3.bf16.msra.mxu1 %v1128_v3  ;;  %933 = vmatprep.mubr.msk.bf16.mxu1 %vm1081_vm2, %v1080_v2 }
 0x2cc   :  { %931 = vmatprep.subr.bf16.mxu1 %v1080_v2 }
 0x2cf   :  { %932 = vmatpush3.bf16.msra.mxu1 %v1143_v6 }
 0x2d0   :  { %945 = vmatprep.subr.bf16.mxu1 %v1080_v2 }
 0x39d   :  { %v279_v35 = vpop.f32.mrb[4].mxu1 }
 0x39e   :  { %v285_v36 = vadd.f32 %v279_v35, %v116_v34  ;;  %v919_v37 = vpop.f32.mrb[5].mxu1 }
 0x39f   :  { %v282_v38 = vpop.f32.mrb[6].mxu1 }
 0x3a0   :  { %1000 = vtanh.f32 %v285_v36  ;;  %v920_v39 = vpop.f32.mrb[7].mxu1  ;;  %v846_v41 = vmul.f32 -1.442695, %v285_v36 }
 0x3a2   :  { %1002 = vpow2.f32 %v846_v41 }
 0x3aa   :  { %v1001_v40 = vpop.eup %1000 }
 0x3ab   :  { %295 = vrot.lane.b32.xlu0 %v1001_v40, %s1083_s7 }
 0x3ac   :  { %v1003_v42 = vpop.eup %1002 }
 0x3ad   :  { %v289_v43 = vadd.f32 1.0, %v1003_v42 }
 0x3af   :  { %1004 = vrcp.f32 %v289_v43  ;;  %v129_v43 = vadd.f32 %v1163_v8, %v1198_v57 }
 0x3b9   :  { %v1005_v44 = vpop.eup %1004 }
 0x3ba   :  { %v293_v47 = vmul.f32 %v1005_v44, %v230_v28 }
 0x41d   :  { %v296_v45 = vpop.permute.xlu0 %295 }
 0x41e   :  { %v298_v46 = vmul.f32 %v1005_v44, %v296_v45 }
 0x420   :  { %300 = vrot.lane.b32.xlu1 %v298_v46, %s1083_s7 }
 0x492   :  { %v301_v48 = vpop.permute.xlu1 %300 }
 0x493   :  { %v303_v49 = vadd.f32 %v301_v48, %v293_v47 }
 0x495   :  { %1006 = vtanh.f32 %v303_v49 }
 0x49f   :  { %v1007_v52 = vpop.eup %1006 }
 0x4a0   :  { %306 = vrot.lane.b32.xlu0 %v1007_v52, %s1083_s7 }
 0x512   :  { %v307_v53 = vpop.permute.xlu0 %306 }
 0x513   :  { %v309_v54 = vmul.f32 %v1005_v44, %v307_v53 }
 0x515   :  { %v311_v55 = vpack.c.bf16 %v309_v54, %v309_v54 }
 0x517   :  { %313 = vrot.lane.b32.xlu1 %v311_v55, %s1084_s3 }
 0x589   :  { %v314_v60 = vpop.permute.xlu1 %313 }
 0x58a   :  { %926 = vmatmul.mubr.msk.bf16.vlgmr.msra.gmra.mrb[8].mxu0 %vm168_vm3, %v314_v60 }
 0x58b   :  { %938 = vmatpush3.bf16.msra.mxu0 %v1128_v3  ;;  %941 = vmatprep.mubr.msk.bf16.mxu0 %vm1081_vm2, %v1080_v2 }
 0x58c   :  { %939 = vmatprep.subr.bf16.mxu0 %v1080_v2 }
 0x58f   :  { %940 = vmatpush3.bf16.msra.mxu0 %v1143_v6 }
 0x590   :  { %953 = vmatprep.subr.bf16.mxu0 %v1080_v2 }
 0x65d   :  { %v352_v62 = vpop.f32.mrb[8].mxu0 }
 0x65e   :  { %v358_v63 = vadd.f32 %v352_v62, %v121_v61  ;;  %v927_v0 = vpop.f32.mrb[9].mxu0 }
 0x65f   :  { %v355_v1 = vpop.f32.mrb[10].mxu0 }
 0x660   :  { %1008 = vtanh.f32 %v358_v63  ;;  %v928_v4 = vpop.f32.mrb[11].mxu0  ;;  %v848_v7 = vmul.f32 -1.442695, %v358_v63 }
 0x662   :  { %1010 = vpow2.f32 %v848_v7 }
 0x66a   :  { %v1009_v5 = vpop.eup %1008 }
 0x66b   :  { %368 = vrot.lane.b32.xlu0 %v1009_v5, %s1083_s7  ;;  %v132_v5 = vadd.f32 %v1163_v8, %v1202_v59 }
 0x66c   :  { %v1011_v10 = vpop.eup %1010 }
 0x66d   :  { %v362_v11 = vadd.f32 1.0, %v1011_v10 }
 0x66f   :  { %1012 = vrcp.f32 %v362_v11 }
 0x679   :  { %v1013_v13 = vpop.eup %1012 }
 0x67a   :  { %v366_v9 = vmul.f32 %v1013_v13, %v303_v49 }
 0x6dd   :  { %v369_v14 = vpop.permute.xlu0 %368 }
 0x6de   :  { %v371_v15 = vmul.f32 %v1013_v13, %v369_v14 }
 0x6e0   :  { %373 = vrot.lane.b32.xlu1 %v371_v15, %s1083_s7 }
 0x752   :  { %v374_v16 = vpop.permute.xlu1 %373 }
 0x753   :  { %v376_v17 = vadd.f32 %v374_v16, %v366_v9 }
 0x755   :  { %1014 = vtanh.f32 %v376_v17 }
 0x75f   :  { %v1015_v18 = vpop.eup %1014 }
 0x760   :  { %379 = vrot.lane.b32.xlu0 %v1015_v18, %s1083_s7 }
 0x7d2   :  { %v380_v19 = vpop.permute.xlu0 %379 }
 0x7d3   :  { %v382_v20 = vmul.f32 %v1013_v13, %v380_v19 }
 0x7d5   :  { %v384_v21 = vpack.c.bf16 %v382_v20, %v382_v20 }
 0x7d7   :  { %386 = vrot.lane.b32.xlu1 %v384_v21, %s1084_s3 }
 0x849   :  { %v387_v22 = vpop.permute.xlu1 %386 }
 0x84a   :  { %934 = vmatmul.mubr.msk.bf16.vlgmr.msra.gmra.mrb[8].mxu1 %vm168_vm3, %v387_v22 }
 0x84b   :  { %946 = vmatpush3.bf16.msra.mxu1 %v1128_v3  ;;  %949 = vmatprep.mubr.msk.bf16.mxu1 %vm1081_vm2, %v1080_v2 }
 0x84c   :  { %947 = vmatprep.subr.bf16.mxu1 %v1080_v2 }
 0x84f   :  { %948 = vmatpush3.bf16.msra.mxu1 %v1143_v6 }
 0x850   :  { %961 = vmatprep.subr.bf16.mxu1 %v1080_v2 }
 0x91d   :  { %v425_v24 = vpop.f32.mrb[8].mxu1 }
 0x91e   :  { %v431_v25 = vadd.f32 %v425_v24, %v124_v23  ;;  %v935_v26 = vpop.f32.mrb[9].mxu1 }
 0x91f   :  { %v428_v27 = vpop.f32.mrb[10].mxu1  ;;  %v137_v26 = vadd.f32 %v1196_v56, %v1163_v8 }
 0x920   :  { %1016 = vtanh.f32 %v431_v25  ;;  %v936_v28 = vpop.f32.mrb[11].mxu1  ;;  %v850_v30 = vmul.f32 -1.442695, %v431_v25 }
 0x922   :  { %1018 = vpow2.f32 %v850_v30 }
 0x92a   :  { %v1017_v29 = vpop.eup %1016 }
 0x92b   :  { %441 = vrot.lane.b32.xlu0 %v1017_v29, %s1083_s7 }
 0x92c   :  { %v1019_v31 = vpop.eup %1018 }
 0x92d   :  { %v435_v32 = vadd.f32 1.0, %v1019_v31 }
 0x92f   :  { %1020 = vrcp.f32 %v435_v32 }
 0x939   :  { %v1021_v33 = vpop.eup %1020 }
 0x93a   :  { %v439_v12 = vmul.f32 %v1021_v33, %v376_v17 }
 0x99d   :  { %v442_v34 = vpop.permute.xlu0 %441 }
 0x99e   :  { %v444_v35 = vmul.f32 %v1021_v33, %v442_v34 }
 0x9a0   :  { %446 = vrot.lane.b32.xlu1 %v444_v35, %s1083_s7 }
 0xa12   :  { %v447_v36 = vpop.permute.xlu1 %446 }
 0xa13   :  { %v449_v37 = vadd.f32 %v447_v36, %v439_v12 }
 0xa15   :  { %1022 = vtanh.f32 %v449_v37 }
 0xa1f   :  { %v1023_v38 = vpop.eup %1022 }
 0xa20   :  { %452 = vrot.lane.b32.xlu0 %v1023_v38, %s1083_s7 }
 0xa92   :  { %v453_v39 = vpop.permute.xlu0 %452 }
 0xa93   :  { %v455_v40 = vmul.f32 %v1021_v33, %v453_v39 }
 0xa95   :  { %v457_v41 = vpack.c.bf16 %v455_v40, %v455_v40 }
 0xa97   :  { %459 = vrot.lane.b32.xlu1 %v457_v41, %s1084_s3 }
 0xb09   :  { %v460_v42 = vpop.permute.xlu1 %459 }
 0xb0a   :  { %942 = vmatmul.mubr.msk.bf16.vlgmr.msra.gmra.mrb[12].mxu0 %vm168_vm3, %v460_v42 }
 0xb0b   :  { %954 = vmatpush3.bf16.msra.mxu0 %v1128_v3  ;;  %957 = vmatprep.mubr.msk.bf16.mxu0 %vm1081_vm2, %v1080_v2 }
 0xb0c   :  { %955 = vmatprep.subr.bf16.mxu0 %v1080_v2 }
 0xb0f   :  { %956 = vmatpush3.bf16.msra.mxu0 %v1143_v6 }
 0xb10   :  { %969 = vmatprep.subr.bf16.mxu0 %v1080_v2 }
 0xbdd   :  { %v498_v44 = vpop.f32.mrb[12].mxu0 }
 0xbde   :  { %v504_v45 = vadd.f32 %v498_v44, %v129_v43  ;;  %v943_v46 = vpop.f32.mrb[13].mxu0 }
 0xbdf   :  { %v501_v47 = vpop.f32.mrb[14].mxu0 }
 0xbe0   :  { %1024 = vtanh.f32 %v504_v45  ;;  %v944_v48 = vpop.f32.mrb[15].mxu0  ;;  %v852_v50 = vmul.f32 -1.442695, %v504_v45  ;;  %v140_v45 = vadd.f32 %v1200_v58, %v1163_v8 }
 0xbe2   :  { %1026 = vpow2.f32 %v852_v50 }
 0xbea   :  { %v1025_v49 = vpop.eup %1024 }
 0xbeb   :  { %514 = vrot.lane.b32.xlu0 %v1025_v49, %s1083_s7 }
 0xbec   :  { %v1027_v51 = vpop.eup %1026 }
 0xbed   :  { %v508_v52 = vadd.f32 1.0, %v1027_v51 }
 0xbef   :  { %1028 = vrcp.f32 %v508_v52 }
 0xbf9   :  { %v1029_v53 = vpop.eup %1028 }
 0xbfa   :  { %v512_v57 = vmul.f32 %v1029_v53, %v449_v37 }
 0xc5d   :  { %v515_v54 = vpop.permute.xlu0 %514 }
 0xc5e   :  { %v517_v55 = vmul.f32 %v1029_v53, %v515_v54 }
 0xc60   :  { %519 = vrot.lane.b32.xlu1 %v517_v55, %s1083_s7 }
 0xcd2   :  { %v520_v60 = vpop.permute.xlu1 %519 }
 0xcd3   :  { %v522_v61 = vadd.f32 %v520_v60, %v512_v57 }
 0xcd5   :  { %1030 = vtanh.f32 %v522_v61 }
 0xcdf   :  { %v1031_v62 = vpop.eup %1030 }
 0xce0   :  { %525 = vrot.lane.b32.xlu0 %v1031_v62, %s1083_s7  ;;  %v990_v62 = vld [vmem:[%s1298_s4] sm:$0xff]  }
 0xd52   :  { %v526_v63 = vpop.permute.xlu0 %525 }
 0xd53   :  { %v528_v0 = vmul.f32 %v1029_v53, %v526_v63  ;;  %v991_v63 = vld [vmem:[%s1298_s4 + $0x8] sm:$0xff]   ;;  %s825_s4 = sshll.u32 %s1085_s17, 4  ;;  %s826_s4 = int_to_ptr.vmem [resolvable:$true] %s825_s4 }
 0xd54   :  { %s1056_s18 = scalar_lea.vmem %s826_s4, 128  ;;  %p1061_p1 = scmp.lt.s32.totalorder %s826_s4, %s826_s4 }
 0xd55   :  { %v530_v1 = vpack.c.bf16 %v528_v0, %v528_v0  ;;  %p1057_p0 = scmp.ne.s32.totalorder %s826_s4, %s1056_s18  ;;  %p1062_p2 = scmp.lt.s32.totalorder %s1056_s18, %s1056_s18 }
 0xd57   :  { %532 = vrot.lane.b32.xlu1 %v530_v1, %s1084_s3  ;;  %p1063_p3 = por %p1062_p2, %p1061_p1 }
 0xd59   :  { %p1064_p4 = pnand %p1063_p3, %p1057_p0 }
 0xdc9   :  { %v533_v4 = vpop.permute.xlu1 %532 }
 0xdca   :  { %950 = vmatmul.mubr.msk.bf16.vlgmr.msra.gmra.mrb[12].mxu1 %vm168_vm3, %v533_v4 }
 0xdcb   :  { %962 = vmatpush3.bf16.msra.mxu1 %v1128_v3  ;;  %965 = vmatprep.mubr.msk.bf16.mxu1 %vm1081_vm2, %v1080_v2 }
 0xdcc   :  { %963 = vmatprep.subr.bf16.mxu1 %v1080_v2 }
 0xdcf   :  { %964 = vmatpush3.bf16.msra.mxu1 %v1143_v6 }
 0xe9d   :  { %v571_v7 = vpop.f32.mrb[12].mxu1 }
 0xe9e   :  { %v577_v10 = vadd.f32 %v571_v7, %v132_v5  ;;  %v951_v11 = vpop.f32.mrb[13].mxu1 }
 0xe9f   :  { %v574_v13 = vpop.f32.mrb[14].mxu1 }
 0xea0   :  { %1032 = vtanh.f32 %v577_v10  ;;  %v952_v14 = vpop.f32.mrb[15].mxu1  ;;  %v854_v3 = vmul.f32 -1.442695, %v577_v10  ;;  %v859_v10 = vld [vmem:[%s1299_s5] ss:$0 sm:$0xff] }
 0xea2   :  { %1034 = vpow2.f32 %v854_v3 }
 0xeaa   :  { %v1033_v15 = vpop.eup %1032 }
 0xeab   :  { %587 = vrot.lane.b32.xlu0 %v1033_v15, %s1083_s7 }
 0xeac   :  { %v1035_v9 = vpop.eup %1034 }
 0xead   :  { %v581_v16 = vadd.f32 1.0, %v1035_v9 }
 0xeaf   :  { %1036 = vrcp.f32 %v581_v16 }
 0xeb9   :  { %v1037_v17 = vpop.eup %1036 }
 0xeba   :  { %v585_v59 = vmul.f32 %v1037_v17, %v522_v61 }
 0xf1d   :  { %v588_v18 = vpop.permute.xlu0 %587 }
 0xf1e   :  { %v590_v6 = vmul.f32 %v1037_v17, %v588_v18 }
 0xf20   :  { %592 = vrot.lane.b32.xlu1 %v590_v6, %s1083_s7 }
 0xf92   :  { %v593_v19 = vpop.permute.xlu1 %592 }
 0xf93   :  { %v595_v20 = vadd.f32 %v593_v19, %v585_v59 }
 0xf95   :  { %1038 = vtanh.f32 %v595_v20 }
 0xf9f   :  { %v1039_v21 = vpop.eup %1038 }
 0xfa0   :  { %598 = vrot.lane.b32.xlu0 %v1039_v21, %s1083_s7 }
0x1012   :  { %v599_v22 = vpop.permute.xlu0 %598 }
0x1013   :  { %v601_v23 = vmul.f32 %v1037_v17, %v599_v22 }
0x1015   :  { %v603_v24 = vpack.c.bf16 %v601_v23, %v601_v23 }
0x1017   :  { %605 = vrot.lane.b32.xlu1 %v603_v24, %s1084_s3 }
0x1089   :  { %v606_v25 = vpop.permute.xlu1 %605 }
0x108a   :  { %958 = vmatmul.mubr.msk.bf16.vlgmr.msra.gmra.mrb[16].mxu0 %vm168_vm3, %v606_v25 }
0x108b   :  { %973 = vmatprep.mubr.msk.bf16.mxu0 %vm1081_vm2, %v1080_v2  ;;  %970 = vmatpush3.bf16.msra.mxu0 %v990_v62 }
0x108c   :  { %971 = vmatprep.subr.bf16.mxu0 %v1080_v2 }
0x108f   :  { %972 = vmatpush3.bf16.msra.mxu0 %v991_v63 }
0x115d   :  { %v644_v27 = vpop.f32.mrb[16].mxu0 }
0x115e   :  { %v650_v28 = vadd.f32 %v644_v27, %v137_v26  ;;  %v959_v29 = vpop.f32.mrb[17].mxu0 }
0x115f   :  { %v647_v30 = vpop.f32.mrb[18].mxu0 }
0x1160   :  { %1040 = vtanh.f32 %v650_v28  ;;  %v960_v31 = vpop.f32.mrb[19].mxu0  ;;  %v856_v33 = vmul.f32 -1.442695, %v650_v28 }
0x1162   :  { %1042 = vpow2.f32 %v856_v33 }
0x116a   :  { %v1041_v32 = vpop.eup %1040 }
0x116b   :  { %660 = vrot.lane.b32.xlu0 %v1041_v32, %s1083_s7 }
0x116c   :  { %v1043_v34 = vpop.eup %1042 }
0x116d   :  { %v654_v35 = vadd.f32 1.0, %v1043_v34 }
0x116f   :  { %1044 = vrcp.f32 %v654_v35 }
0x1179   :  { %v1045_v12 = vpop.eup %1044 }
0x117a   :  { %v658_v56 = vmul.f32 %v1045_v12, %v595_v20 }
0x11dd   :  { %v661_v36 = vpop.permute.xlu0 %660 }
0x11de   :  { %v663_v37 = vmul.f32 %v1045_v12, %v661_v36 }
0x11e0   :  { %665 = vrot.lane.b32.xlu1 %v663_v37, %s1083_s7 }
0x1252   :  { %v666_v38 = vpop.permute.xlu1 %665 }
0x1253   :  { %v668_v39 = vadd.f32 %v666_v38, %v658_v56 }
0x1255   :  { %1046 = vtanh.f32 %v668_v39 }
0x125f   :  { %v1047_v40 = vpop.eup %1046 }
0x1260   :  { %671 = vrot.lane.b32.xlu0 %v1047_v40, %s1083_s7 }
0x12d2   :  { %v672_v41 = vpop.permute.xlu0 %671 }
0x12d3   :  { %v674_v42 = vmul.f32 %v1045_v12, %v672_v41 }
0x12d5   :  { %v676_v43 = vpack.c.bf16 %v674_v42, %v674_v42 }
0x12d7   :  { %678 = vrot.lane.b32.xlu1 %v676_v43, %s1084_s3 }
0x1349   :  { %v679_v44 = vpop.permute.xlu1 %678 }
0x134a   :  { %966 = vmatmul.mubr.msk.bf16.vlgmr.msra.gmra.mrb[16].mxu1 %vm168_vm3, %v679_v44 }
0x141d   :  { %v717_v46 = vpop.f32.mrb[16].mxu1 }
0x141e   :  { %v723_v47 = vadd.f32 %v717_v46, %v140_v45  ;;  %v967_v48 = vpop.f32.mrb[17].mxu1 }
0x141f   :  { %v720_v49 = vpop.f32.mrb[18].mxu1 }
0x1420   :  { %1048 = vtanh.f32 %v723_v47  ;;  %v968_v50 = vpop.f32.mrb[19].mxu1  ;;  %v858_v52 = vmul.f32 -1.442695, %v723_v47 }
0x1422   :  { %1050 = vpow2.f32 %v858_v52 }
0x142a   :  { %v1049_v51 = vpop.eup %1048 }
0x142b   :  { %733 = vrot.lane.b32.xlu0 %v1049_v51, %s1083_s7 }
0x142c   :  { %v1051_v53 = vpop.eup %1050 }
0x142d   :  { %v727_v54 = vadd.f32 1.0, %v1051_v53 }
0x142f   :  { %1052 = vrcp.f32 %v727_v54 }
0x1439   :  { %v1053_v55 = vpop.eup %1052 }
0x143a   :  { %v731_v8 = vmul.f32 %v1053_v55, %v668_v39 }
0x149d   :  { %v734_v57 = vpop.permute.xlu0 %733 }
0x149e   :  { %v736_v60 = vmul.f32 %v1053_v55, %v734_v57 }
0x14a0   :  { %738 = vrot.lane.b32.xlu1 %v736_v60, %s1083_s7 }
0x1512   :  { %v739_v58 = vpop.permute.xlu1 %738 }
0x1513   :  { %v741_v61 = vadd.f32 %v739_v58, %v731_v8 }
0x1515   :  { %1054 = vtanh.f32 %v741_v61 }
0x151f   :  { %v1055_v0 = vpop.eup %1054 }
0x1520   :  { %744 = vrot.lane.b32.xlu0 %v1055_v0, %s1083_s7 }
0x1592   :  { %v745_v1 = vpop.permute.xlu0 %744 }
0x1593   :  { %v747_v4 = vmul.f32 %v1053_v55, %v745_v1 }
0x1595   :  { %v748_v5 = vpack.c.bf16 %v747_v4, %v747_v4 }
0x1597   :  { %761 = vrot.lane.b32.xlu1 %v748_v5, %s1084_s3 }
0x1609   :  { %v762_v7 = vpop.permute.xlu1 %761 }
0x160a   :  { %974 = vmatmul.mubr.msk.bf16.vlgmr.msra.gmra.mrb[20].mxu0 %vm168_vm3, %v762_v7 }
0x16dd   :  { %v812_v11 = vpop.f32.mrb[20].mxu0 }
0x16de   :  { %v813_v2 = vadd.f32 %v859_v10, %v812_v11  ;;  %v975_v13 = vpop.f32.mrb[21].mxu0 }
0x16df   :  { %v815_v14 = vpop.f32.mrb[22].mxu0 }
0x16e0   :  { %818 = vst [vmem:[#allocation3] sm:$0xff] %v813_v2  ;;  %v976_v15 = vpop.f32.mrb[23].mxu0 }
0x16e1   :  { %1067 = shalt.err (!%p1064_p4)
}
0x16e2   :  { %s1068_s5 = scalar_lea.hbm %s1300_s6, 128 }
0x16e3   :  { %p1069_p5 = scmp.ne.s32.totalorder %s1300_s6, %s1068_s5  ;;  %p1072_p6 = scmp.lt.u32.totalorder %s1068_s5, %s1300_s6 }
0x16e5   :  { %p1074_p7 = pnand %p1072_p6, %p1069_p5 }
0x16e7   :  { %1077 = shalt.err (!%p1074_p7)
}
0x16e8   :  { %828 = dma.vmem_to_hbm [thread:$0]  %s826_s4, 128, %s1300_s6, [#allocation4]  }
0x16e9   :  { %1078 = dma.done.wait [#allocation4], 128  }
0x16ea   :  { %1079 = vsyncadd [#allocation4], 4294967168 }
0x16eb   :  { %832 = vsyncpa [#allocation4], 1 }

</bundles_post_ra>
